<compile_context>
chip_gen: v7x
topology: tpu7x:2x2x1
jax: 0.10.0
libtpu: 0.0.40
codegen_flags: <defaults>
</compile_context>

<pallas_src>
import functools

import jax
import jax.numpy as jnp
import numpy as np
from jax.experimental import pallas as pl
from jax.experimental.pallas import tpu as pltpu


@functools.lru_cache(maxsize=None)
def _vmem_capacity_bytes():
    """Best-effort per-core VMEM capacity; conservative (v7x) fallback."""
    try:
        info = pltpu.get_tpu_info()
        for attr in ("vmem_capacity_bytes", "vmem_size_bytes", "vmem_bytes"):
            v = getattr(info, attr, None)
            if v:
                return int(v)
    except Exception:
        pass
    return 64 << 20  # v7x per-TensorCore VMEM; safe lower bound everywhere


def _pick_chunk(c):
    """Lane-chunk width for pooling: ~8 vregs (32 KiB f32) per accumulator."""
    return max(128, min(512, ((8192 // max(c, 1)) // 128) * 128))


def _pick_nb(n, max_nb):
    """Largest divisor of n that fits the block budget (=> no padding).

    Keeps >= 2 grid steps when n > 1 (both v7x TensorCores busy; the extra
    ~0.35 us step on single-core chips is negligible) and prefers an even
    step count so work splits evenly across two cores.
    """
    cap = min(max_nb, 32)
    if n > 1:
        cap = min(cap, n // 2)
    cap = max(cap, 1)
    divisors = [d for d in range(1, cap + 1) if n % d == 0]
    best = max(divisors)
    even = [d for d in divisors if ((n // d) % 2) == 0]
    if even and 2 * max(even) >= best:
        return max(even)
    return best


def _pool_image(x_ref, b, hw, chunk):
    """Avg/max pool image `b` of the block over the spatial (lane) axis.

    Chunked VPU accumulation over `chunk`-wide lane slices (sum accumulator in
    f32, max accumulator kept in the INPUT dtype - max is exact), then one
    cross-lane (XLU) reduce.  Returns f32 (C, 1) avg and max.
    """
    n_full = hw // chunk
    rem = hw - n_full * chunk

    s = None  # (C, 1) f32 partial sum
    m = None  # (C, 1) input-dtype partial max

    if n_full > 0:
        first = x_ref[b, :, pl.ds(0, chunk)]
        init = (first.astype(jnp.float32), first)

        def body(i, carry):
            acc_s, acc_m = carry
            start = i * chunk
            if not isinstance(start, int):
                start = pl.multiple_of(start, chunk)
            sl = x_ref[b, :, pl.ds(start, chunk)]
            return acc_s + sl.astype(jnp.float32), jnp.maximum(acc_m, sl)

        if n_full - 1 <= 8:      # short static trip count: unroll for ILP
            acc_s, acc_m = init
            for i in range(1, n_full):
                acc_s, acc_m = body(i, (acc_s, acc_m))
        else:                    # long: rolled loop keeps code size flat
            acc_s, acc_m = jax.lax.fori_loop(1, n_full, body, init)
        s = jnp.sum(acc_s, axis=-1, keepdims=True)
        m = jnp.max(acc_m, axis=-1, keepdims=True)

    if rem > 0:
        tail = x_ref[b, :, pl.ds(n_full * chunk, rem)]
        ts = jnp.sum(tail.astype(jnp.float32), axis=-1, keepdims=True)
        tm = jnp.max(tail, axis=-1, keepdims=True)
        s = ts if s is None else s + ts
        m = tm if m is None else jnp.maximum(m, tm)

    return s * (1.0 / hw), m.astype(jnp.float32)


def _channel_attention_kernel(x_ref, w1t_ref, w2_ref, o_ref, *, hw, chunk):
    # x_ref / o_ref block: (NB, C, HW); w1t: (C, Cr) (= w1.T); w2: (C, Cr).
    nb = x_ref.shape[0]

    # Tiny shared-MLP weights: load + cast once per grid step (hoisted).
    w1t = w1t_ref[...].astype(jnp.float32)
    w2 = w2_ref[...].astype(jnp.float32)

    def mlp(p):  # (C, 1) f32 -> (C, 1) f32, all on the VPU (no tiny matmuls)
        h = jnp.maximum(jnp.sum(w1t * p, axis=0, keepdims=True), 0.0)  # (1, Cr)
        return jnp.sum(w2 * h, axis=-1, keepdims=True)                 # (C, 1)

    def per_image(b):
        avg, mx = _pool_image(x_ref, b, hw, chunk)                     # (C, 1) f32
        att = jax.nn.sigmoid(mlp(avg) + mlp(mx)).astype(o_ref.dtype)   # (C, 1)
        # Gate in the input dtype; att broadcasts across the HW lanes.
        o_ref[b, :, :] = x_ref[b, :, :] * att

    if nb <= 8:                  # small static trip count: unroll at trace time
        for b in range(nb):
            per_image(b)
    else:                        # rolled loop: flat code size, bounded vregs

        @pl.loop(0, nb)
        def _(b):
            per_image(b)


@jax.jit
def channel_attention(x, w1, w2):
    """x: (N, C, H, W); w1: (C//r, C); w2: (C, C//r)."""
    N, C, H, W = x.shape
    Cr = w1.shape[0]
    HW = H * W
    x2 = x.reshape(N, C, HW)     # free metadata reshape: C -> sublanes, HW -> lanes
    itemsize = jnp.dtype(x.dtype).itemsize

    vmem_cap = _vmem_capacity_bytes()
    block_budget = (3 * vmem_cap) // 8   # budget for double-buffered in + out blocks
    vmem_limit = (3 * vmem_cap) // 4

    per_image = C * HW * itemsize
    max_nb = max(1, block_budget // (4 * per_image))
    nb = _pick_nb(N, max_nb)
    grid_len = N // nb                   # nb divides N: no pad, no output slice-copy
    # TODO(synk): add a two-pass HW-tiled path (pool+MLP pass, then gate pass) for
    # single images that exceed the per-block VMEM budget and for N == 1 on v7x.

    chunk = _pick_chunk(C)
    kernel = functools.partial(_channel_attention_kernel, hw=HW, chunk=chunk)

    out = pl.pallas_call(
        kernel,
        out_shape=jax.ShapeDtypeStruct((N, C, HW), x.dtype),
        grid_spec=pltpu.PrefetchScalarGridSpec(
            num_scalar_prefetch=0,
            grid=(grid_len,),
            in_specs=[
                pl.BlockSpec((nb, C, HW), lambda g: (g, 0, 0)),
                pl.BlockSpec((C, Cr), lambda g: (0, 0)),   # w1.T
                pl.BlockSpec((C, Cr), lambda g: (0, 0)),   # w2
            ],
            out_specs=pl.BlockSpec((nb, C, HW), lambda g: (g, 0, 0)),
        ),
        compiler_params=pltpu.CompilerParams(
            dimension_semantics=("parallel",),
            vmem_limit_bytes=int(vmem_limit)),
    )(x2, w1.T, w2)

    return out.reshape(N, C, H, W)


def _reference(x, w1, w2):
    # Pure-JAX reference of the PyTorch forward.
    avg = jnp.mean(x, axis=(2, 3))                 # (N, C)
    mx = jnp.max(x, axis=(2, 3))                   # (N, C)

    def mlp(p):                                    # (N, C) -> (N, C)
        return jnp.maximum(p @ w1.T, 0.0) @ w2.T

    att = jax.nn.sigmoid(mlp(avg) + mlp(mx))       # (N, C)
    return x * att[:, :, None, None]


if __name__ == "__main__":
    def run_case(key, n, c, h, w, ratio, rtol, atol):
        cr = max(c // ratio, 1)
        kx, k1, k2 = jax.random.split(key, 3)
        x = jax.random.normal(kx, (n, c, h, w), dtype=jnp.float32)
        w1 = jax.random.normal(k1, (cr, c), dtype=jnp.float32) * (1.0 / np.sqrt(c))
        w2 = jax.random.normal(k2, (c, cr), dtype=jnp.float32) * (1.0 / np.sqrt(cr))
        y = channel_attention(x, w1, w2)
        jax.block_until_ready(y)
        y_ref = _reference(x, w1, w2)
        np.testing.assert_allclose(np.asarray(y), np.asarray(y_ref),
                                   rtol=rtol, atol=atol)

    key = jax.random.PRNGKey(0)
    k1, k2, k3 = jax.random.split(key, 3)
    # Small case from the module spec (single chunk, unrolled image loop).
    run_case(k1, 2, 32, 16, 16, 16, 1e-5, 1e-5)
    # Rolled chunk loop + ragged lane tail (HW=1600, chunk=128, nb=2, grid=2).
    run_case(k2, 4, 64, 40, 40, 16, 1e-5, 1e-5)
    # Rolled image loop (nb=10) with HW < chunk (tail-only pooling path).
    run_case(k3, 20, 32, 8, 8, 16, 1e-5, 1e-5)
    print("KERNEL_OK")
</pallas_src>

<mosaic_0001>
module attributes {stable_mosaic.version = 11 : i64} {
  func.func @_channel_attention_kernel(%arg0: i32, %arg1: memref<1x32x256xf32, #tpu.memory_space<vmem>>, %arg2: memref<32x2xf32, #tpu.memory_space<vmem>>, %arg3: memref<32x2xf32, #tpu.memory_space<vmem>>, %arg4: memref<1x32x256xf32, #tpu.memory_space<vmem>>) attributes {dimension_semantics = [#tpu.dimension_semantics<parallel>], iteration_bounds = array<i64: 2>, scalar_prefetch = 0 : i64, scratch_operands = 0 : i64, tpu.core_type = #tpu.core_type<tc>, window_params = [{transform_indices = @transform_0, window_bounds = array<i64: 1, 32, 256>}, {pipeline_mode = #tpu.pipeline_mode<synchronous>, transform_indices = @transform_1, window_bounds = array<i64: 32, 2>}, {pipeline_mode = #tpu.pipeline_mode<synchronous>, transform_indices = @transform_2, window_bounds = array<i64: 32, 2>}, {transform_indices = @transform_3, window_bounds = array<i64: 1, 32, 256>}]} {
    %c0 = arith.constant 0 : index
    %c0_0 = arith.constant 0 : index
    %0 = vector.load %arg2[%c0, %c0_0] : memref<32x2xf32, #tpu.memory_space<vmem>>, vector<32x2xf32>
    %c0_1 = arith.constant 0 : index
    %c0_2 = arith.constant 0 : index
    %1 = vector.load %arg3[%c0_1, %c0_2] : memref<32x2xf32, #tpu.memory_space<vmem>>, vector<32x2xf32>
    %c0_3 = arith.constant 0 : index
    %c0_4 = arith.constant 0 : index
    %c0_5 = arith.constant 0 : index
    %2 = vector.load %arg1[%c0_3, %c0_4, %c0_5] : memref<1x32x256xf32, #tpu.memory_space<vmem>>, vector<1x32x256xf32>
    %3 = vector.shape_cast %2 : vector<1x32x256xf32> to vector<32x256xf32>
    %cst = arith.constant dense<0.000000e+00> : vector<32xf32>
    %4 = vector.multi_reduction <add>, %3, %cst [1] : vector<32x256xf32> to vector<32xf32>
    %5 = vector.shape_cast %4 : vector<32xf32> to vector<32x1xf32>
    %cst_6 = arith.constant dense<0xFF800000> : vector<32xf32>
    %6 = vector.multi_reduction <maximumf>, %3, %cst_6 [1] : vector<32x256xf32> to vector<32xf32>
    %7 = vector.shape_cast %6 : vector<32xf32> to vector<32x1xf32>
    %cst_7 = arith.constant 3.906250e-03 : f32
    %8 = vector.broadcast %cst_7 : f32 to vector<32x1xf32>
    %9 = arith.mulf %5, %8 : vector<32x1xf32>
    %10 = vector.broadcast %9 : vector<32x1xf32> to vector<32x2xf32>
    %11 = arith.mulf %0, %10 : vector<32x2xf32>
    %cst_8 = arith.constant dense<0.000000e+00> : vector<2xf32>
    %12 = vector.multi_reduction <add>, %11, %cst_8 [0] : vector<32x2xf32> to vector<2xf32>
    %13 = vector.shape_cast %12 : vector<2xf32> to vector<1x2xf32>
    %cst_9 = arith.constant 0.000000e+00 : f32
    %14 = vector.broadcast %cst_9 : f32 to vector<1x2xf32>
    %15 = arith.maximumf %13, %14 : vector<1x2xf32>
    %16 = vector.broadcast %15 : vector<1x2xf32> to vector<32x2xf32>
    %17 = arith.mulf %1, %16 : vector<32x2xf32>
    %cst_10 = arith.constant dense<0.000000e+00> : vector<32xf32>
    %18 = vector.multi_reduction <add>, %17, %cst_10 [1] : vector<32x2xf32> to vector<32xf32>
    %19 = vector.shape_cast %18 : vector<32xf32> to vector<32x1xf32>
    %20 = vector.broadcast %7 : vector<32x1xf32> to vector<32x2xf32>
    %21 = arith.mulf %0, %20 : vector<32x2xf32>
    %cst_11 = arith.constant dense<0.000000e+00> : vector<2xf32>
    %22 = vector.multi_reduction <add>, %21, %cst_11 [0] : vector<32x2xf32> to vector<2xf32>
    %23 = vector.shape_cast %22 : vector<2xf32> to vector<1x2xf32>
    %cst_12 = arith.constant 0.000000e+00 : f32
    %24 = vector.broadcast %cst_12 : f32 to vector<1x2xf32>
    %25 = arith.maximumf %23, %24 : vector<1x2xf32>
    %26 = vector.broadcast %25 : vector<1x2xf32> to vector<32x2xf32>
    %27 = arith.mulf %1, %26 : vector<32x2xf32>
    %cst_13 = arith.constant dense<0.000000e+00> : vector<32xf32>
    %28 = vector.multi_reduction <add>, %27, %cst_13 [1] : vector<32x2xf32> to vector<32xf32>
    %29 = vector.shape_cast %28 : vector<32xf32> to vector<32x1xf32>
    %30 = arith.addf %19, %29 : vector<32x1xf32>
    %31 = arith.negf %30 : vector<32x1xf32>
    %32 = math.exp %31 : vector<32x1xf32>
    %cst_14 = arith.constant 1.000000e+00 : f32
    %33 = vector.broadcast %cst_14 : f32 to vector<32x1xf32>
    %34 = arith.addf %33, %32 : vector<32x1xf32>
    %35 = arith.divf %33, %34 : vector<32x1xf32>
    %c0_15 = arith.constant 0 : index
    %c0_16 = arith.constant 0 : index
    %c0_17 = arith.constant 0 : index
    %36 = vector.load %arg1[%c0_15, %c0_16, %c0_17] : memref<1x32x256xf32, #tpu.memory_space<vmem>>, vector<1x32x256xf32>
    %37 = vector.shape_cast %36 : vector<1x32x256xf32> to vector<32x256xf32>
    %38 = vector.broadcast %35 : vector<32x1xf32> to vector<32x256xf32>
    %39 = arith.mulf %37, %38 : vector<32x256xf32>
    %c0_18 = arith.constant 0 : index
    %c0_19 = arith.constant 0 : index
    %c0_20 = arith.constant 0 : index
    %40 = vector.load %arg4[%c0_18, %c0_19, %c0_20] : memref<1x32x256xf32, #tpu.memory_space<vmem>>, vector<1x32x256xf32>
    %41 = vector.shape_cast %40 : vector<1x32x256xf32> to vector<32x256xf32>
    %42 = vector.shape_cast %39 : vector<32x256xf32> to vector<1x32x256xf32>
    tpu.vector_store %arg4[%c0_18, %c0_19, %c0_20], %42 {strides = array<i32>} : memref<1x32x256xf32, #tpu.memory_space<vmem>>, vector<1x32x256xf32>,
    return
  }
  func.func @transform_0(%arg0: i32) -> (i32, i32, i32) {
    %c0_i32 = arith.constant 0 : i32
    %c0_i32_0 = arith.constant 0 : i32
    %c0_i32_1 = arith.constant 0 : i32
    return %arg0, %c0_i32, %c0_i32_0 : i32, i32, i32
  }
  func.func @transform_1(%arg0: i32) -> (i32, i32) {
    %c0_i32 = arith.constant 0 : i32
    %c0_i32_0 = arith.constant 0 : i32
    %c0_i32_1 = arith.constant 0 : i32
    return %c0_i32, %c0_i32_0 : i32, i32
  }
  func.func @transform_2(%arg0: i32) -> (i32, i32) {
    %c0_i32 = arith.constant 0 : i32
    %c0_i32_0 = arith.constant 0 : i32
    %c0_i32_1 = arith.constant 0 : i32
    return %c0_i32, %c0_i32_0 : i32, i32
  }
  func.func @transform_3(%arg0: i32) -> (i32, i32, i32) {
    %c0_i32 = arith.constant 0 : i32
    %c0_i32_0 = arith.constant 0 : i32
    %c0_i32_1 = arith.constant 0 : i32
    return %arg0, %c0_i32, %c0_i32_0 : i32, i32, i32
  }
}

</mosaic_0001>

<bundles_post_ra>
// kernel: channel_attention.1
= control target key start
LH: loop header
LB: loop body
LE: loop exit
PB: predicated region body
PF: predicated region fallthrough
CT: control target
= control target key end

     0   :  { %s452_s12 = smov 0   ;;  %s556_s0 = inlined_call_operand.vmem [shape: f32[2,32,256], index: 0, kind: input, shape index: {}]   ;;  %s557_s1 = inlined_call_operand.vmem [shape: f32[32,2], index: 1, kind: input, shape index: {}]   ;;  %s558_s2 = inlined_call_operand.vmem [shape: f32[32,2], index: 2, kind: input, shape index: {}]   ;;  %s559_s3 = inlined_call_operand.vmem [shape: f32[2,32,256], index: 3, kind: output, shape index: {}]  }
   0x1 LB: > { %s383_s13 = sadd.s32 4294967295, %s430_s12   ;;  %p387_p0 = scmp.ge.s32.totalorder %s430_s12, 1  ;;  %s430_s12 = sphi %s452_s12, %s13_s12  }
   0x2   : > { %p137_p1 = scmp.lt.s32.totalorder %s430_s12, 3 }
   0x4   : > { %p138_p2 = pnand %p387_p0, %p137_p1 }
   0x5   : > { %p161_p3 = scmp.lt.s32.totalorder (!%p138_p2), %s383_s13, 1  ;;  %v171_v19 = vld [vmem:[%s557_s1] sm:$0xff] (!%p138_p2)  ;;  %v172_v23 = vld [vmem:[%s557_s1 + $0x8] sm:$0xff] (!%p138_p2)  ;;  %v173_v24 = vld [vmem:[%s557_s1 + $0x10] sm:$0xff] (!%p138_p2)  ;;  %vm219_vm0 = vcmask (!%p138_p2), 15360  }
   0x6   : > { %141 = sbr.rel (%p138_p2) target bundleno = 384 (0x180), region = 32  ;;  %v174_v30 = vld [vmem:[%s557_s1 + $0x18] sm:$0xff] (!%p138_p2) }
   0xd   : > { %s561_s13 = smov (!%p161_p3, %s383_s13), 1 }
   0xe   : > { %s398_s14 = sshll.u32 %s561_s13, 6 }
   0xf   : > { %s165_s17 = scalar_lea.vmem %s556_s0, %s398_s14  ;;  %s170_s9 = scalar_lea.vmem %s559_s3, %s398_s14 }
  0x10   : > { %v468_v0 = vld [vmem:[%s165_s17 + $0x20] sm:$0xff]  ;;  %v470_v1 = vld [vmem:[%s165_s17 + $0x28] sm:$0xff]  ;;  %v478_v5 = vld [vmem:[%s165_s17 + $0x10] sm:$0xff] }
  0x11   : > { %v472_v2 = vld [vmem:[%s165_s17] sm:$0xff]  ;;  %v193_v3 = vadd.f32 %v470_v1, %v468_v0  ;;  %v476_v4 = vld [vmem:[%s165_s17 + $0x8] sm:$0xff]  ;;  %v480_v6 = vld [vmem:[%s165_s17 + $0x18] sm:$0xff]  ;;  %v205_v15 = vmax.f32 %v468_v0, %v470_v1 }
  0x12   : > { %v187_v7 = vadd.f32 %v476_v4, %v472_v2  ;;  %v199_v8 = vmax.f32 %v472_v2, %v476_v4  ;;  %v190_v9 = vadd.f32 %v480_v6, %v478_v5  ;;  %v488_v10 = vld [vmem:[%s165_s17 + $0x30] sm:$0xff]  ;;  %v490_v11 = vld [vmem:[%s165_s17 + $0x38] sm:$0xff]  ;;  %v202_v13 = vmax.f32 %v478_v5, %v480_v6 }
  0x13   : > { %194 = vadd.xlane.f32.xlu1 %v193_v3  ;;  %v196_v12 = vadd.f32 %v490_v11, %v488_v10  ;;  %v208_v14 = vmax.f32 %v488_v10, %v490_v11 }
  0x14   : > { %188 = vadd.xlane.f32.xlu0 %v187_v7 }
  0x17   : > { %200 = vmax.xlane.f32.xlu1 %v199_v8 }
  0x18   : > { %191 = vadd.xlane.f32.xlu0 %v190_v9 }
  0x1b   : > { %197 = vadd.xlane.f32.xlu1 %v196_v12  ;;  %v176_v12 = vld [vmem:[%s558_s2 + $0x8] sm:$0xff] }
  0x1c   : > { %203 = vmax.xlane.f32.xlu0 %v202_v13  ;;  %v175_v13 = vld [vmem:[%s558_s2] sm:$0xff] }
  0x1f   : > { %209 = vmax.xlane.f32.xlu1 %v208_v14 }
  0x20   : > { %206 = vmax.xlane.f32.xlu0 %v205_v15 }
  0xa0   : > { %v195_v16 = vpop.xlane.xlu1 %194 }
  0xa1   : > { %v189_v17 = vpop.xlane.xlu0 %188  ;;  %v213_v20 = vmul.f32 0.00390625, %v195_v16 }
  0xa2   : > { %v211_v18 = vmul.f32 0.00390625, %v189_v17 }
  0xa3   : > { %v217_v29 = vmul.f32 %v213_v20, %v173_v24  ;;  %v178_v20 = vld [vmem:[%s558_s2 + $0x18] sm:$0xff] }
  0xa4   : > { %v201_v21 = vpop.xlane.xlu1 %200  ;;  %v215_v25 = vmul.f32 %v211_v18, %v171_v19 }
  0xa5   : > { %v192_v22 = vpop.xlane.xlu0 %191  ;;  %v250_v34 = vmul.f32 %v201_v21, %v171_v19  ;;  %v223_v40 = vsel %vm219_vm0, %v217_v29, 0.0  ;;  %v177_v21 = vld [vmem:[%s558_s2 + $0x10] sm:$0xff] }
  0xa6   : > { %v212_v26 = vmul.f32 0.00390625, %v192_v22  ;;  %v220_v33 = vsel %vm219_vm0, %v215_v25, 0.0 }
  0xa7   : > { %v254_v46 = vsel %vm219_vm0, %v250_v34, 0.0 }
  0xa8   : > { %v198_v27 = vpop.xlane.xlu1 %197  ;;  %v216_v28 = vmul.f32 %v212_v26, %v172_v23 }
  0xa9   : > { %v214_v31 = vmul.f32 0.00390625, %v198_v27  ;;  %v204_v32 = vpop.xlane.xlu0 %203 }
  0xaa   : > { %v221_v35 = vsel %vm219_vm0, %v216_v28, 0.0  ;;  %v251_v36 = vmul.f32 %v204_v32, %v172_v23 }
  0xab   : > { %v222_v37 = vadd.f32 %v221_v35, %v220_v33  ;;  %v218_v38 = vmul.f32 %v214_v31, %v174_v30 }
  0xac   : > { %v255_v39 = vsel %vm219_vm0, %v251_v36, 0.0  ;;  %v210_v41 = vpop.xlane.xlu1 %209 }
  0xad   : > { %v224_v42 = vadd.f32 %v223_v40, %v222_v37  ;;  %v207_v43 = vpop.xlane.xlu0 %206  ;;  %v225_v44 = vsel %vm219_vm0, %v218_v38, 0.0  ;;  %v253_v45 = vmul.f32 %v210_v41, %v174_v30  ;;  %v256_v48 = vadd.f32 %v255_v39, %v254_v46 }
  0xae   : > { %v252_v47 = vmul.f32 %v207_v43, %v173_v24 }
  0xaf   : > { %v226_v49 = vadd.f32 %v225_v44, %v224_v42  ;;  %v259_v51 = vsel %vm219_vm0, %v253_v45, 0.0 }
  0xb0   : > { %v257_v50 = vsel %vm219_vm0, %v252_v47, 0.0 }
  0xb1   : > { %v258_v52 = vadd.f32 %v257_v50, %v256_v48  ;;  %v227_v53 = vrot.slane %v226_v49, 4 }
  0xb3   : > { %v228_v54 = vadd.f32 %v227_v53, %v226_v49  ;;  %v260_v55 = vadd.f32 %v259_v51, %v258_v52 }
  0xb5   : > { %v229_v56 = vrot.slane %v228_v54, 2  ;;  %v261_v57 = vrot.slane %v260_v55, 4 }
  0xb7   : > { %v230_v58 = vadd.f32 %v229_v56, %v228_v54  ;;  %v262_v59 = vadd.f32 %v261_v57, %v260_v55 }
  0xb9   : > { %v231_v60 = vrot.slane %v230_v58, 1  ;;  %v263_v61 = vrot.slane %v262_v59, 2 }
  0xbb   : > { %v264_v62 = vadd.f32 %v263_v61, %v262_v59  ;;  %v232_v3 = vadd.f32 %v231_v60, %v230_v58 }
  0xbd   : > { %v265_v63 = vrot.slane %v264_v62, 1  ;;  %v233_v9 = vmax.f32 %v232_v3, 0.0 }
  0xbf   : > { %v266_v7 = vadd.f32 %v265_v63, %v264_v62  ;;  %v235_v18 = vmul.f32 %v233_v9, %v176_v12  ;;  %v234_v19 = vmul.f32 %v233_v9, %v175_v13  ;;  %v237_v24 = vmul.f32 %v233_v9, %v178_v20 }
  0xc0   : > { %v236_v25 = vmul.f32 %v233_v9, %v177_v21 }
  0xc1   : > { %v267_v8 = vmax.f32 %v266_v7, 0.0  ;;  %v241_v22 = vsel %vm219_vm0, %v235_v18, 0.0  ;;  %v238_v23 = vsel %vm219_vm0, %v234_v19, 0.0  ;;  %v247_v26 = vsel %vm219_vm0, %v237_v24, 0.0 }
  0xc2   : > { %v244_v27 = vsel %vm219_vm0, %v236_v25, 0.0 }
  0xc3   : > { %v269_v14 = vmul.f32 %v267_v8, %v176_v12  ;;  %v268_v15 = vmul.f32 %v267_v8, %v175_v13  ;;  %v271_v28 = vmul.f32 %v267_v8, %v178_v20  ;;  %v270_v29 = vmul.f32 %v267_v8, %v177_v21 }
  0xc5   : > { %v275_v16 = vsel %vm219_vm0, %v269_v14, 0.0  ;;  %v272_v17 = vsel %vm219_vm0, %v268_v15, 0.0  ;;  %v281_v30 = vsel %vm219_vm0, %v271_v28, 0.0  ;;  %v278_v31 = vsel %vm219_vm0, %v270_v29, 0.0 }
  0xc6   : > { %276 = vadd.xlane.f32.xlu1 %v275_v16  ;;  %273 = vadd.xlane.f32.xlu0 %v272_v17 }
  0xca   : > { %242 = vadd.xlane.f32.xlu1 %v241_v22  ;;  %239 = vadd.xlane.f32.xlu0 %v238_v23 }
  0xce   : > { %248 = vadd.xlane.f32.xlu1 %v247_v26  ;;  %245 = vadd.xlane.f32.xlu0 %v244_v27 }
  0xd2   : > { %282 = vadd.xlane.f32.xlu1 %v281_v30  ;;  %279 = vadd.xlane.f32.xlu0 %v278_v31 }
 0x153   : > { %v277_v32 = vpop.xlane.xlu1 %276  ;;  %v274_v33 = vpop.xlane.xlu0 %273 }
 0x157   : > { %v243_v34 = vpop.xlane.xlu1 %242  ;;  %v240_v35 = vpop.xlane.xlu0 %239 }
 0x158   : > { %v285_v36 = vadd.f32 %v277_v32, %v243_v34  ;;  %v284_v37 = vadd.f32 %v274_v33, %v240_v35 }
 0x15a   : > { %v393_v38 = vmul.f32 -1.442695, %v285_v36  ;;  %v392_v39 = vmul.f32 -1.442695, %v284_v37 }
 0x15b   : > { %v249_v40 = vpop.xlane.xlu1 %248  ;;  %v246_v41 = vpop.xlane.xlu0 %245 }
 0x15c   : > { %408 = vpow2.f32 %v393_v38 }
 0x15d   : > { %410 = vpow2.f32 %v392_v39 }
 0x15f   : > { %v283_v42 = vpop.xlane.xlu1 %282  ;;  %v280_v43 = vpop.xlane.xlu0 %279 }
 0x160   : > { %v287_v44 = vadd.f32 %v283_v42, %v249_v40  ;;  %v286_v45 = vadd.f32 %v280_v43, %v246_v41 }
 0x162   : > { %v395_v46 = vmul.f32 -1.442695, %v287_v44  ;;  %v394_v47 = vmul.f32 -1.442695, %v286_v45 }
 0x164   : > { %412 = vpow2.f32 %v395_v46 }
 0x165   : > { %414 = vpow2.f32 %v394_v47 }
 0x166   : > { %v409_v48 = vpop.eup %408 }
 0x167   : > { %v411_v49 = vpop.eup %410  ;;  %v301_v50 = vadd.f32 1.0, %v409_v48 }
 0x168   : > { %v300_v51 = vadd.f32 1.0, %v411_v49 }
 0x169   : > { %416 = vrcp.f32 %v301_v50 }
 0x16a   : > { %418 = vrcp.f32 %v300_v51 }
 0x16e   : > { %v413_v52 = vpop.eup %412 }
 0x16f   : > { %v415_v53 = vpop.eup %414  ;;  %v303_v54 = vadd.f32 1.0, %v413_v52 }
 0x170   : > { %v302_v55 = vadd.f32 1.0, %v415_v53 }
 0x171   : > { %420 = vrcp.f32 %v303_v54 }
 0x172   : > { %422 = vrcp.f32 %v302_v55 }
 0x173   : > { %v417_v56 = vpop.eup %416 }
 0x174   : > { %v419_v57 = vpop.eup %418  ;;  %v314_v58 = vmul.f32 %v417_v56, %v478_v5  ;;  %v315_v59 = vmul.f32 %v417_v56, %v480_v6 }
 0x175   : > { %v312_v60 = vmul.f32 %v419_v57, %v472_v2  ;;  %v313_v61 = vmul.f32 %v419_v57, %v476_v4 }
 0x176   : > { %322 = vst [vmem:[%s170_s9 + $0x10] sm:$0xff] %v314_v58  ;;  %323 = vst [vmem:[%s170_s9 + $0x18] sm:$0xff] %v315_v59 }
 0x177   : > { %320 = vst [vmem:[%s170_s9] sm:$0xff] %v312_v60  ;;  %321 = vst [vmem:[%s170_s9 + $0x8] sm:$0xff] %v313_v61 }
 0x17b   : > { %v421_v62 = vpop.eup %420 }
 0x17c   : > { %v423_v63 = vpop.eup %422  ;;  %v318_v3 = vmul.f32 %v421_v62, %v488_v10  ;;  %v319_v7 = vmul.f32 %v421_v62, %v490_v11 }
 0x17d   : > { %v316_v8 = vmul.f32 %v423_v63, %v468_v0  ;;  %v317_v5 = vmul.f32 %v423_v63, %v470_v1 }
 0x17e   : > { %326 = vst [vmem:[%s170_s9 + $0x30] sm:$0xff] %v318_v3  ;;  %327 = vst [vmem:[%s170_s9 + $0x38] sm:$0xff] %v319_v7 }
 0x17f   : > { %324 = vst [vmem:[%s170_s9 + $0x20] sm:$0xff] %v316_v8  ;;  %325 = vst [vmem:[%s170_s9 + $0x28] sm:$0xff] %v317_v5 }
 0x180 PF: > { %s13_s12 = sadd.s32 1, %s430_s12  }
 0x181   : > { %p10_p4 = scmp.ge.s32.totalorder %s13_s12, 4  }
 0x183   :  { %12 = sbr.rel (!%p10_p4) target bundleno = 1 (0x1), region = 62 }

</bundles_post_ra>
